<compile_context>
chip_gen: v7x
topology: tpu7x:2x2x1
jax: 0.10.0
libtpu: 0.0.40
codegen_flags: <defaults>
</compile_context>

<pallas_src>
from functools import partial

import jax
import jax.numpy as jnp
from jax.experimental import pallas as pl
from jax.experimental.pallas import tpu as pltpu

# ---- static configuration (consistent with the encoder that owns this module) ----
B = 2        # batch
T = 16       # sequence length (time steps the softmax runs over)
S = 32       # in_size  (RNN hidden size feeding the attention)
H_ATT = 16   # hidden_size of each attention head
N_HEADS = 2  # number of attention heads


# ---- fused multi-head attention-pooling kernel -----------------------------------
def multi_attention_kernel(xt_ref, w1_ref, w2_ref, out_ref, *,
                           n_b, n_t, in_size, hidden_size, n_heads):
    nhh = n_heads * hidden_size          # packed hidden width (all heads)
    nhs = n_heads * in_size              # packed output width  (all heads)

    # x_tiled is (B*T, NH*S) with x repeated per head; its first S lanes are x itself.
    xf = xt_ref[:, :in_size]             # (B*T, S)
    wh = w1_ref[:in_size, :]             # (S, NH*H)    all heads side by side
    bh = w1_ref[in_size:in_size + 1, :]  # (1, NH*H)    bias row folded into the slab
    wo = w2_ref[:nhh, :]                 # (NH*H, NH*S) block-diagonal over heads
    bo = w2_ref[nhh:nhh + 1, :]          # (1, NH*S)

    # ONE matmul pair for all heads (tanh rides the EUP slot).
    hid = jnp.tanh(jnp.dot(xf, wh, preferred_element_type=jnp.float32) + bh)
    scores = jnp.dot(hid, wo, preferred_element_type=jnp.float32) + bo   # (B*T, NH*S)

    # softmax over the time axis (dim=1 of the original (B, T, S) input), per column.
    scores = scores.reshape(n_b, n_t, nhs)               # sublane split: T=16 % 8 == 0
    smax = jnp.max(scores, axis=1, keepdims=True)
    e = jnp.exp(scores - smax)
    alpha = e / jnp.sum(e, axis=1, keepdims=True)         # exact divide (tiny; keeps test tight)

    # weighted pooling: x_tiled is already head-stacked, so the result is produced in
    # its final lane layout -> one dense store, no in-kernel concat.
    x3 = xt_ref[...].reshape(n_b, n_t, nhs)               # (B, T, NH*S)
    out_ref[...] = jnp.sum(alpha * x3, axis=1)            # (B, NH*S)


# ---- wrapper ----------------------------------------------------------------------
def multi_attention_forward(x, w1, w2):
    """x: (B, T, in_size) f32.  w1: (S+1, NH*H), w2: (NH*H+1, NH*S) packed slabs.
    Returns (B, n_heads * in_size)."""
    n_b, n_t, in_size = x.shape
    nhh = w1.shape[1]
    nhs = w2.shape[1]
    n_heads = nhs // in_size
    hidden_size = nhh // n_heads

    # Flatten + tile x along features in the wrapper (free XLA-side reshape / one tile),
    # so the kernel never reshapes its input and never concatenates its output.
    x_tiled = jnp.tile(x, (1, 1, n_heads)).reshape(n_b * n_t, nhs)

    vm = pl.BlockSpec(memory_space=pltpu.MemorySpace.VMEM)

    flops = (2 * n_b * n_t * in_size * nhh          # hidden matmul
             + 2 * n_b * n_t * nhh * nhs            # out matmul (block-diag, fixed-size pass)
             + 8 * n_b * n_t * nhs)                 # softmax + weighted sum elementwise
    transcendentals = n_b * n_t * (nhh + nhs)       # tanh + exp
    bytes_accessed = 4 * (x_tiled.size + w1.size + w2.size + n_b * nhs)

    return pl.pallas_call(
        partial(multi_attention_kernel,
                n_b=n_b, n_t=n_t, in_size=in_size,
                hidden_size=hidden_size, n_heads=n_heads),
        out_shape=jax.ShapeDtypeStruct((n_b, nhs), jnp.float32),
        in_specs=[vm, vm, vm],
        out_specs=vm,
        cost_estimate=pl.CostEstimate(flops=flops,
                                      transcendentals=transcendentals,
                                      bytes_accessed=bytes_accessed),
    )(x_tiled, w1, w2)


# ---- parameter init & packing -----------------------------------------------------
def init_params(key):
    ks = jax.random.split(key, 4)
    g = lambda k, shape, s=0.1: s * jax.random.normal(k, shape, jnp.float32)
    return dict(
        wh=g(ks[0], (N_HEADS, S, H_ATT)), bh=g(ks[1], (N_HEADS, 1, H_ATT)),
        wo=g(ks[2], (N_HEADS, H_ATT, S)), bo=g(ks[3], (N_HEADS, 1, S)),
    )


def pack_params(params):
    """Build the two lane-dense weight slabs once, at parameter-pack time."""
    n_heads, in_size, hidden_size = params['wh'].shape
    # hidden Linear of all heads side by side, bias appended as the last row.
    wh_all = jnp.concatenate([params['wh'][h] for h in range(n_heads)], axis=1)  # (S, NH*H)
    bh_all = jnp.concatenate([params['bh'][h] for h in range(n_heads)], axis=1)  # (1, NH*H)
    w1 = jnp.concatenate([wh_all, bh_all], axis=0)                               # (S+1, NH*H)
    # out Linear as a block-diagonal so one matmul yields head-stacked scores.
    wo_blk = jax.scipy.linalg.block_diag(
        *[params['wo'][h] for h in range(n_heads)])                              # (NH*H, NH*S)
    bo_all = jnp.concatenate([params['bo'][h] for h in range(n_heads)], axis=1)  # (1, NH*S)
    w2 = jnp.concatenate([wo_blk, bo_all], axis=0)                               # (NH*H+1, NH*S)
    return w1, w2


# ---- pure-JAX reference (for an in-script sanity check) ---------------------------
def multi_attention_ref(x, params):
    outs = []
    for h in range(params['wh'].shape[0]):
        hid = jnp.tanh(x @ params['wh'][h] + params['bh'][h])
        scores = hid @ params['wo'][h] + params['bo'][h]
        alpha = jax.nn.softmax(scores, axis=1)          # softmax over time (dim=1)
        outs.append(jnp.sum(alpha * x, axis=1))
    return jnp.concatenate(outs, axis=1)


if __name__ == "__main__":
    key = jax.random.PRNGKey(0)
    k_x, k_p = jax.random.split(key)
    x = jax.random.normal(k_x, (B, T, S), jnp.float32)
    params = init_params(k_p)
    w1, w2 = pack_params(params)

    out = jax.block_until_ready(multi_attention_forward(x, w1, w2))

    assert out.shape == (B, N_HEADS * S)
    assert bool(jnp.all(jnp.isfinite(out)))
    ref = multi_attention_ref(x, params)
    assert bool(jnp.allclose(out, ref, rtol=1e-4, atol=1e-4))
    print("KERNEL_OK")
</pallas_src>

<mosaic_0001>
module attributes {stable_mosaic.version = 11 : i64} {
  func.func @multi_attention_kernel(%arg0: memref<32x64xf32, #tpu.memory_space<vmem>>, %arg1: memref<33x32xf32, #tpu.memory_space<vmem>>, %arg2: memref<33x64xf32, #tpu.memory_space<vmem>>, %arg3: memref<2x64xf32, #tpu.memory_space<vmem>>) attributes {dimension_semantics = [], scalar_prefetch = 0 : i64, scratch_operands = 0 : i64, tpu.core_type = #tpu.core_type<tc>} {
    %c0 = arith.constant 0 : index
    %c0_0 = arith.constant 0 : index
    %0 = vector.load %arg0[%c0, %c0_0] : memref<32x64xf32, #tpu.memory_space<vmem>>, vector<32x32xf32>
    %c0_1 = arith.constant 0 : index
    %c0_2 = arith.constant 0 : index
    %1 = vector.load %arg1[%c0_1, %c0_2] : memref<33x32xf32, #tpu.memory_space<vmem>>, vector<32x32xf32>
    %c32 = arith.constant 32 : index
    %c0_3 = arith.constant 0 : index
    %2 = vector.load %arg1[%c32, %c0_3] : memref<33x32xf32, #tpu.memory_space<vmem>>, vector<1x32xf32>
    %c0_4 = arith.constant 0 : index
    %c0_5 = arith.constant 0 : index
    %3 = vector.load %arg2[%c0_4, %c0_5] : memref<33x64xf32, #tpu.memory_space<vmem>>, vector<32x64xf32>
    %c32_6 = arith.constant 32 : index
    %c0_7 = arith.constant 0 : index
    %4 = vector.load %arg2[%c32_6, %c0_7] : memref<33x64xf32, #tpu.memory_space<vmem>>, vector<1x64xf32>
    %cst = arith.constant dense<0.000000e+00> : vector<32x32xf32>
    %5 = tpu.matmul %0, %1, %cst {dimension_numbers = #tpu.dot_dimension_numbers<[1], [0], [0], [1], [0, 0, 1, 1], [], []>} : vector<32x32xf32>, vector<32x32xf32>, vector<32x32xf32> -> vector<32x32xf32>
    %6 = vector.broadcast %2 : vector<1x32xf32> to vector<32x32xf32>
    %7 = arith.addf %5, %6 : vector<32x32xf32>
    %8 = math.tanh %7 : vector<32x32xf32>
    %cst_8 = arith.constant dense<0.000000e+00> : vector<32x64xf32>
    %9 = tpu.matmul %8, %3, %cst_8 {dimension_numbers = #tpu.dot_dimension_numbers<[1], [0], [0], [1], [0, 0, 1, 1], [], []>} : vector<32x32xf32>, vector<32x64xf32>, vector<32x64xf32> -> vector<32x64xf32>
    %10 = vector.broadcast %4 : vector<1x64xf32> to vector<32x64xf32>
    %11 = arith.addf %9, %10 : vector<32x64xf32>
    %12 = vector.shape_cast %11 : vector<32x64xf32> to vector<2x16x64xf32>
    %cst_9 = arith.constant dense<0xFF800000> : vector<2x64xf32>
    %13 = vector.multi_reduction <maximumf>, %12, %cst_9 [1] : vector<2x16x64xf32> to vector<2x64xf32>
    %14 = vector.shape_cast %13 : vector<2x64xf32> to vector<2x1x64xf32>
    %15 = vector.broadcast %14 : vector<2x1x64xf32> to vector<2x16x64xf32>
    %16 = arith.subf %12, %15 : vector<2x16x64xf32>
    %17 = math.exp %16 : vector<2x16x64xf32>
    %cst_10 = arith.constant dense<0.000000e+00> : vector<2x64xf32>
    %18 = vector.multi_reduction <add>, %17, %cst_10 [1] : vector<2x16x64xf32> to vector<2x64xf32>
    %19 = vector.shape_cast %18 : vector<2x64xf32> to vector<2x1x64xf32>
    %20 = vector.broadcast %19 : vector<2x1x64xf32> to vector<2x16x64xf32>
    %21 = arith.divf %17, %20 : vector<2x16x64xf32>
    %c0_11 = arith.constant 0 : index
    %c0_12 = arith.constant 0 : index
    %22 = vector.load %arg0[%c0_11, %c0_12] : memref<32x64xf32, #tpu.memory_space<vmem>>, vector<32x64xf32>
    %23 = vector.shape_cast %22 : vector<32x64xf32> to vector<2x16x64xf32>
    %24 = arith.mulf %21, %23 : vector<2x16x64xf32>
    %cst_13 = arith.constant dense<0.000000e+00> : vector<2x64xf32>
    %25 = vector.multi_reduction <add>, %24, %cst_13 [1] : vector<2x16x64xf32> to vector<2x64xf32>
    %c0_14 = arith.constant 0 : index
    %c0_15 = arith.constant 0 : index
    %26 = vector.load %arg3[%c0_14, %c0_15] : memref<2x64xf32, #tpu.memory_space<vmem>>, vector<2x64xf32>
    tpu.vector_store %arg3[%c0_14, %c0_15], %25 {strides = array<i32>} : memref<2x64xf32, #tpu.memory_space<vmem>>, vector<2x64xf32>,
    return
  }
}

</mosaic_0001>

<bundles_post_ra>
// kernel: tpu_custom_call.1
= control target key start
LH: loop header
LB: loop body
LE: loop exit
PB: predicated region body
PF: predicated region fallthrough
CT: control target
= control target key end

     0   :  { %vm33_vm0 = vcmask 261120   ;;  %s560_s0 = inlined_call_operand.vmem [shape: f32[32,64], index: 0, kind: input, shape index: {}]   ;;  %s561_s1 = inlined_call_operand.vmem [shape: f32[33,32], index: 1, kind: input, shape index: {}]   ;;  %s562_s2 = inlined_call_operand.vmem [shape: f32[33,64], index: 2, kind: input, shape index: {}]   ;;  %s563_s3 = inlined_call_operand.hbm [shape: f32[2,64], index: 3, kind: output, shape index: {}]  }
   0x1   :  { %v19_v0 = vld [vmem:[%s561_s1] sm:$0xff]  ;;  %v20_v1 = vld [vmem:[%s561_s1 + $0x8] sm:$0xff]  ;;  %v21_v2 = vld [vmem:[%s561_s1 + $0x10] sm:$0xff] }
   0x2   :  { %v388_v3 = vpack.c.bf16 %v20_v1, %v19_v0  ;;  %v22_v4 = vld [vmem:[%s561_s1 + $0x18] sm:$0xff]  ;;  %v485_v5 = vld [vmem:[%s560_s0] sm:$0xff] }
   0x3   :  { %v392_v6 = vpack.c.bf16 %v22_v4, %v21_v2  ;;  %368 = vmatprep.mubr.msk.f32.mxu0 %vm33_vm0, %v485_v5 }
   0x4   :  { %8 = vsyncpa [#allocation3], 0  ;;  %389 = vmatprep.subr.bf16.mxu0 %v388_v3  ;;  %v492_v7 = vld [vmem:[%s560_s0 + $0x8] sm:$0xff]  ;;  %v497_v8 = vld [vmem:[%s560_s0 + $0x10] sm:$0xff]  ;;  %vm236_vm1 = vcmask 523264   ;;  %vm315_vm2 = vcmask 1041409  }
   0x5   :  { %391 = vmatpush3.bf16.msra.mxu0 %v388_v3  ;;  %v506_v9 = vld [vmem:[%s560_s0 + $0x18] sm:$0xff]  ;;  %v24_v10 = vld [vmem:[%s562_s2] sm:$0xff]  ;;  %v25_v11 = vld [vmem:[%s562_s2 + $0x8] sm:$0xff]  ;;  %vm318_vm3 = vcmask 517120  }
   0x6   :  { %393 = vmatprep.subr.bf16.mxu0 %v392_v6  ;;  %v396_v12 = vpack.c.bf16 %v25_v11, %v24_v10  ;;  %v26_v13 = vld [vmem:[%s562_s2 + $0x10] sm:$0xff]  ;;  %v27_v14 = vld [vmem:[%s562_s2 + $0x18] sm:$0xff]  ;;  %v334_v16 = vld [vmem:[%s561_s1 + $0x20] ss:$0 sm:$0xff] }
   0x7   :  { %v400_v15 = vpack.c.bf16 %v27_v14, %v26_v13  ;;  %v339_v29 = vld [vmem:[%s562_s2 + $0x20] ss:$0 sm:$0xff]  ;;  %s449_s2 = smov [#allocation2]  }
   0x8   :  { %397 = vmatprep.subr.bf16.mxu1 %v396_v12  ;;  %s326_s11 = sshll.u32 %s449_s2, 4  ;;  %s327_s11 = int_to_ptr.vmem [resolvable:$true] %s326_s11 }
   0x9   :  { %395 = vmatpush3.bf16.msra.mxu0 %v392_v6  ;;  %399 = vmatpush3.bf16.msra.mxu1 %v396_v12  ;;  %s425_s12 = scalar_lea.vmem %s327_s11, 32  ;;  %p430_p1 = scmp.lt.s32.totalorder %s327_s11, %s327_s11 }
   0xa   :  { %401 = vmatprep.subr.bf16.mxu1 %v400_v15  ;;  %p426_p0 = scmp.ne.s32.totalorder %s327_s11, %s425_s12  ;;  %p431_p2 = scmp.lt.s32.totalorder %s425_s12, %s425_s12 }
   0xc   :  { %369 = vmatmul.mubr.msk.f32.vlgmr.msra.gmra.mrb[0].mxu0 %vm33_vm0, %v492_v7  ;;  %p432_p3 = por %p431_p2, %p430_p1 }
   0xd   :  { %371 = vmatprep.mubr.msk.f32.mxu0 %vm33_vm0, %v497_v8  ;;  %403 = vmatpush3.bf16.msra.mxu1 %v400_v15 }
   0xe   :  { %p433_p4 = pnand %p432_p3, %p426_p0 }
  0x10   :  { %372 = vmatmul.mubr.msk.f32.gmra.mrb[2].mxu0 %vm33_vm0, %v506_v9 }
  0xdf   :  { %v370_v17 = vpop.f32.mrb[0].mxu0 }
  0xe0   :  { %v118_v18 = vadd.f32 %v370_v17, %v334_v16  ;;  %v112_v19 = vpop.f32.mrb[1].mxu0 }
  0xe1   :  { %v113_v20 = vadd.f32 %v334_v16, %v112_v19 }
  0xe3   :  { %405 = vtanh.f32 %v113_v20  ;;  %v373_v21 = vpop.f32.mrb[2].mxu0 }
  0xe4   :  { %407 = vtanh.f32 %v118_v18  ;;  %v128_v22 = vadd.f32 %v373_v21, %v334_v16  ;;  %v122_v23 = vpop.f32.mrb[3].mxu0 }
  0xe5   :  { %v123_v24 = vadd.f32 %v334_v16, %v122_v23 }
  0xe7   :  { %409 = vtanh.f32 %v123_v24 }
  0xe8   :  { %411 = vtanh.f32 %v128_v22 }
  0xed   :  { %v406_v25 = vpop.eup %405 }
  0xee   :  { %v408_v26 = vpop.eup %407  ;;  %382 = vmatprep.mubr.msk.f32.mxu1 %vm33_vm0, %v406_v25 }
  0xef   :  { %383 = vmatmul.mubr.msk.f32.vlgmr.msra.gmra.mrb[0].mxu1 %vm33_vm0, %v408_v26 }
  0xf1   :  { %v410_v27 = vpop.eup %409 }
  0xf2   :  { %v412_v28 = vpop.eup %411  ;;  %385 = vmatprep.mubr.msk.f32.mxu1 %vm33_vm0, %v410_v27 }
  0xf3   :  { %386 = vmatmul.mubr.msk.f32.gmra.mrb[2].mxu1 %vm33_vm0, %v412_v28 }
 0x1c2   :  { %v384_v30 = vpop.f32.mrb[0].mxu1 }
 0x1c3   :  { %v223_v31 = vadd.f32 %v384_v30, %v339_v29  ;;  %v217_v32 = vpop.f32.mrb[1].mxu1 }
 0x1c4   :  { %v218_v33 = vadd.f32 %v339_v29, %v217_v32 }
 0x1c5   :  { %v238_v34 = vsel %vm236_vm1, %v223_v31, -inf }
 0x1c6   :  { %v237_v35 = vsel %vm236_vm1, %v218_v33, -inf  ;;  %v387_v36 = vpop.f32.mrb[2].mxu1 }
 0x1c7   :  { %v239_v37 = vmax.f32 %v237_v35, %v238_v34  ;;  %v233_v38 = vadd.f32 %v387_v36, %v339_v29  ;;  %v227_v39 = vpop.f32.mrb[3].mxu1 }
 0x1c8   :  { %v228_v40 = vadd.f32 %v339_v29, %v227_v39 }
 0x1c9   :  { %v240_v41 = vrot.slane %v239_v37, 4  ;;  %v247_v42 = vsel %vm236_vm1, %v233_v38, -inf }
 0x1ca   :  { %v246_v43 = vsel %vm236_vm1, %v228_v40, -inf }
 0x1cb   :  { %v241_v44 = vmax.f32 %v239_v37, %v240_v41  ;;  %v248_v45 = vmax.f32 %v246_v43, %v247_v42 }
 0x1cd   :  { %v242_v46 = vrot.slane %v241_v44, 2  ;;  %v249_v47 = vrot.slane %v248_v45, 4 }
 0x1cf   :  { %v243_v48 = vmax.f32 %v241_v44, %v242_v46  ;;  %v250_v49 = vmax.f32 %v248_v45, %v249_v47 }
 0x1d1   :  { %v244_v50 = vrot.slane %v243_v48, 1  ;;  %v251_v51 = vrot.slane %v250_v49, 2 }
 0x1d3   :  { %v245_v52 = vmax.f32 %v243_v48, %v244_v50  ;;  %v252_v53 = vmax.f32 %v250_v49, %v251_v51 }
 0x1d5   :  { %v255_v54 = vsub.f32 %v218_v33, %v245_v52  ;;  %v256_v55 = vsub.f32 %v223_v31, %v245_v52  ;;  %v253_v56 = vrot.slane %v252_v53, 1 }
 0x1d7   :  { %v259_v57 = vmul.f32 1.442695, %v255_v54  ;;  %v261_v58 = vmul.f32 1.442695, %v256_v55  ;;  %v254_v59 = vmax.f32 %v252_v53, %v253_v56 }
 0x1d9   :  { %413 = vpow2.f32 %v259_v57  ;;  %v257_v60 = vsub.f32 %v228_v40, %v254_v59  ;;  %v258_v61 = vsub.f32 %v233_v38, %v254_v59 }
 0x1da   :  { %415 = vpow2.f32 %v261_v58 }
 0x1db   :  { %v263_v62 = vmul.f32 1.442695, %v257_v60  ;;  %v265_v63 = vmul.f32 1.442695, %v258_v61 }
 0x1dd   :  { %417 = vpow2.f32 %v263_v62 }
 0x1de   :  { %419 = vpow2.f32 %v265_v63 }
 0x1e3   :  { %v414_v0 = vpop.eup %413 }
 0x1e4   :  { %v416_v1 = vpop.eup %415  ;;  %v267_v2 = vsel %vm236_vm1, %v414_v0, 0.0 }
 0x1e5   :  { %v268_v3 = vsel %vm236_vm1, %v416_v1, 0.0 }
 0x1e6   :  { %v269_v4 = vadd.f32 %v268_v3, %v267_v2 }
 0x1e7   :  { %v418_v6 = vpop.eup %417 }
 0x1e8   :  { %v420_v10 = vpop.eup %419  ;;  %v270_v11 = vrot.slane %v269_v4, 4  ;;  %v276_v12 = vsel %vm236_vm1, %v418_v6, 0.0 }
 0x1e9   :  { %v277_v13 = vsel %vm236_vm1, %v420_v10, 0.0 }
 0x1ea   :  { %v271_v14 = vadd.f32 %v270_v11, %v269_v4  ;;  %v278_v15 = vadd.f32 %v277_v13, %v276_v12 }
 0x1ec   :  { %v272_v16 = vrot.slane %v271_v14, 2  ;;  %v279_v17 = vrot.slane %v278_v15, 4 }
 0x1ee   :  { %v273_v18 = vadd.f32 %v272_v16, %v271_v14  ;;  %v280_v19 = vadd.f32 %v279_v17, %v278_v15 }
 0x1f0   :  { %v274_v20 = vrot.slane %v273_v18, 1  ;;  %v281_v21 = vrot.slane %v280_v19, 2 }
 0x1f2   :  { %v275_v22 = vadd.f32 %v274_v20, %v273_v18  ;;  %v282_v23 = vadd.f32 %v281_v21, %v280_v19 }
 0x1f4   :  { %421 = vrcp.f32 %v275_v22  ;;  %v283_v24 = vrot.slane %v282_v23, 1 }
 0x1f6   :  { %v284_v25 = vadd.f32 %v283_v24, %v282_v23 }
 0x1f8   :  { %423 = vrcp.f32 %v284_v25 }
 0x1fe   :  { %v422_v26 = vpop.eup %421 }
 0x1ff   :  { %v286_v27 = vmul.f32 %v422_v26, %v414_v0  ;;  %v287_v28 = vmul.f32 %v422_v26, %v416_v1 }
 0x201   :  { %v291_v29 = vmul.f32 %v286_v27, %v485_v5  ;;  %v292_v30 = vmul.f32 %v287_v28, %v492_v7 }
 0x202   :  { %v424_v31 = vpop.eup %423 }
 0x203   :  { %v289_v32 = vmul.f32 %v424_v31, %v418_v6  ;;  %v290_v33 = vmul.f32 %v424_v31, %v420_v10  ;;  %v295_v34 = vsel %vm236_vm1, %v291_v29, 0.0  ;;  %v296_v35 = vsel %vm236_vm1, %v292_v30, 0.0 }
 0x204   :  { %v297_v36 = vadd.f32 %v296_v35, %v295_v34 }
 0x205   :  { %v293_v37 = vmul.f32 %v289_v32, %v497_v8  ;;  %v294_v38 = vmul.f32 %v290_v33, %v506_v9 }
 0x206   :  { %v298_v39 = vrot.slane %v297_v36, 4 }
 0x207   :  { %v304_v40 = vsel %vm236_vm1, %v293_v37, 0.0  ;;  %v305_v41 = vsel %vm236_vm1, %v294_v38, 0.0 }
 0x208   :  { %v299_v5 = vadd.f32 %v298_v39, %v297_v36  ;;  %v306_v42 = vadd.f32 %v305_v41, %v304_v40 }
 0x20a   :  { %v300_v7 = vrot.slane %v299_v5, 2  ;;  %v307_v43 = vrot.slane %v306_v42, 4 }
 0x20c   :  { %v301_v44 = vadd.f32 %v300_v7, %v299_v5  ;;  %v308_v45 = vadd.f32 %v307_v43, %v306_v42 }
 0x20e   :  { %v309_v46 = vrot.slane %v308_v45, 2  ;;  %v302_v47 = vrot.slane %v301_v44, 1 }
 0x210   :  { %v310_v48 = vadd.f32 %v309_v46, %v308_v45  ;;  %v303_v8 = vadd.f32 %v302_v47, %v301_v44 }
 0x212   :  { %v311_v49 = vrot.slane %v310_v48, 1 }
 0x214   :  { %v312_v9 = vadd.f32 %v311_v49, %v310_v48 }
 0x216   :  { %v316_v50 = vsel %vm315_vm2, %v312_v9, %v303_v8 }
 0x217   :  { %319 = vst.msk [vmem:[#allocation2] sm:$0x3] %vm318_vm3, %v316_v50 }
 0x218   :  { %436 = shalt.err (!%p433_p4)
}
 0x219   :  { %s437_s15 = scalar_lea.hbm %s563_s3, 32 }
 0x21a   :  { %p438_p5 = scmp.ne.s32.totalorder %s563_s3, %s437_s15  ;;  %p441_p6 = scmp.lt.u32.totalorder %s437_s15, %s563_s3 }
 0x21c   :  { %p443_p7 = pnand %p441_p6, %p438_p5 }
 0x21e   :  { %446 = shalt.err (!%p443_p7)
}
 0x21f   :  { %329 = dma.vmem_to_hbm [thread:$0]  %s327_s11, 32, %s563_s3, [#allocation3]  }
 0x220   :  { %447 = dma.done.wait [#allocation3], 32  }
 0x221   :  { %448 = vsyncadd [#allocation3], 4294967264 }
 0x222   :  { %333 = vsyncpa [#allocation3], 1 }

</bundles_post_ra>
